<compile_context>
chip_gen: v7x
topology: tpu7x:2x2x1
jax: 0.10.0
libtpu: 0.0.40
codegen_flags: <defaults>
</compile_context>

<pallas_src>
import jax
import jax.numpy as jnp
from jax import lax
from jax.experimental import pallas as pl
from jax.experimental.pallas import tpu as pltpu

ALPHA = 1.0
GAMMA = 1.0

LANES = 128          # vreg lane width
_PAD_LOGIT = -1e9    # padding logit -> BCE == 0 -> focal contribution == 0


def _cdiv(a, b):
    return (a + b - 1) // b


def _chip_tuning():
    """Per-generation (max_tile_rows, num_splits).

    v7x: 2048-row tiles amortize per-step pipeline overhead against 3.2 TB/s
    HBM, and 2 row-splits give each TensorCore its own accumulator slab.
    v6e: 2048-row tiles, single split.  v5e / unknown: 1024-row tiles, single
    split.  All choices stay well inside the default scoped-VMEM limit.
    """
    kind = ""
    try:
        kind = jax.devices()[0].device_kind.lower()
    except Exception:
        pass
    if "v7" in kind:
        return 2048, 2
    if "v6" in kind:
        return 2048, 1
    return 1024, 1


def _make_focal_kernel(rows, tile_rows, tiles_per_split, num_blocks,
                       has_extra_block):
    """Kernel over one (tile_rows, 128) tile; the per-split output slab is the
    accumulator (resident across the 'arbitrary' grid axis)."""
    last_block_partial = num_blocks * tile_rows > rows

    def kernel(x_ref, t_ref, o_ref):
        c = pl.program_id(0)
        i = pl.program_id(1)

        @pl.when(i == 0)
        def _():
            o_ref[...] = jnp.zeros_like(o_ref)

        # Upcast in-kernel: streams cross HBM in their native dtype (bf16
        # halves read bytes); the cast is free VALU work on the loaded tile.
        x = x_ref[...].astype(jnp.float32)
        t = t_ref[...].astype(jnp.float32)

        # Numerically stable BCE-with-logits (matches
        # F.binary_cross_entropy_with_logits, soft targets included):
        #   bce = max(x, 0) - x*t + log1p(exp(-|x|))
        bce = jnp.maximum(x, 0.0) - x * t + jnp.log1p(jnp.exp(-jnp.abs(x)))
        pt = jnp.exp(-bce)
        # TODO(synk): for strictly-binary targets on v7x, the z=(2t-1)*x
        # sigmoid/softplus rewrite drops one exp (3 -> 2 EUP ops/elem); kept
        # general here for soft-target / tolerance parity with PyTorch.
        one_minus_pt = 1.0 - pt
        mod = one_minus_pt if GAMMA == 1.0 else one_minus_pt ** GAMMA
        f = mod * bce
        if ALPHA != 1.0:
            f = ALPHA * f

        blk = c * tiles_per_split + i

        if last_block_partial:
            # Final block overhangs the array: Pallas feeds unspecified data
            # for the out-of-bounds rows -> mask their contribution to 0.
            row_ids = blk * tile_rows + lax.broadcasted_iota(
                jnp.int32, f.shape, 0)
            f = jnp.where(row_ids < rows, f, 0.0)

        if has_extra_block:
            # With 2 splits and an odd block count, the last split revisits a
            # clamped duplicate of the final block: skip its contribution.
            @pl.when(blk < num_blocks)
            def _():
                o_ref[...] += f
        else:
            o_ref[...] += f

    return kernel


@jax.jit
def focal_loss(inputs, targets):
    """mean(alpha * (1 - exp(-BCE))**gamma * BCE), BCE = BCE-with-logits."""
    assert inputs.shape == targets.shape
    n_valid = inputs.size
    max_tile_rows, num_splits = _chip_tuning()

    # Keep native dtypes: no wrapper astype (would materialize an f32 copy in
    # HBM); the kernel upcasts per tile.
    x = inputs.reshape(-1)
    t = targets.reshape(-1)

    rem = n_valid % LANES
    if rem:
        # TODO(synk): a sub-128 ragged tail forces one padded copy of both
        # streams; every common NN shape (size % 128 == 0) takes the copy-free
        # path below.  Padding identity: x=-1e9, t=0 -> BCE == 0 exactly.
        pad = LANES - rem
        x = jnp.pad(x, (0, pad), constant_values=_PAD_LOGIT)
        t = jnp.pad(t, (0, pad), constant_values=0.0)

    rows = x.size // LANES
    x = x.reshape(rows, LANES)   # contiguous reshape: no data movement
    t = t.reshape(rows, LANES)

    # Tile rows: the full array if it fits one tile (block == full dim is a
    # legal layout), else the per-chip maximum (multiple of 16, so bf16
    # (16,128) tiling also holds).  A ragged last block is masked in-kernel,
    # so no full-array pad is ever needed.
    tile_rows = rows if rows <= max_tile_rows else max_tile_rows
    num_blocks = _cdiv(rows, tile_rows)
    if num_splits > num_blocks:
        num_splits = 1
    tiles_per_split = _cdiv(num_blocks, num_splits)
    has_extra_block = num_splits * tiles_per_split > num_blocks

    if has_extra_block:
        def in_map(c, i):
            # Clamp the (at most one) over-the-end block onto the last valid
            # block; its contribution is skipped in-kernel.
            return (jnp.minimum(c * tiles_per_split + i, num_blocks - 1), 0)
    else:
        def in_map(c, i):
            return (c * tiles_per_split + i, 0)

    in_spec = pl.BlockSpec((tile_rows, LANES), in_map)
    # One resident, lane-dense (tile_rows, 128) f32 partial-sum slab per split.
    out_spec = pl.BlockSpec((None, tile_rows, LANES), lambda c, i: (c, 0, 0))

    kernel = _make_focal_kernel(rows, tile_rows, tiles_per_split, num_blocks,
                                has_extra_block)

    partials = pl.pallas_call(
        kernel,
        out_shape=jax.ShapeDtypeStruct((num_splits, tile_rows, LANES),
                                       jnp.float32),
        grid_spec=pltpu.PrefetchScalarGridSpec(
            num_scalar_prefetch=0,
            grid=(num_splits, tiles_per_split),
            in_specs=[in_spec, in_spec],
            out_specs=out_spec,
        ),
        # TODO(synk): on v7x, verify in the Mosaic dump that the leading
        # "parallel" axis shards across both TensorCores; switch to
        # pltpu.CORE_PARALLEL if it does not.
        compiler_params=pltpu.CompilerParams(
            dimension_semantics=("parallel", "arbitrary")),
    )(x, t)

    # Single small final reduction + mean normalization (fused under jit).
    return partials.sum() / jnp.float32(n_valid)


def focal_loss_ref(inputs, targets):
    x = inputs.astype(jnp.float32)
    t = targets.astype(jnp.float32)
    bce = jnp.maximum(x, 0.0) - x * t + jnp.log1p(jnp.exp(-jnp.abs(x)))
    pt = jnp.exp(-bce)
    return jnp.mean(ALPHA * (1.0 - pt) ** GAMMA * bce)


if __name__ == "__main__":
    key = jax.random.PRNGKey(0)
    k1, k2 = jax.random.split(key)
    # NCHW inputs consistent with a conv-style segmentation head.
    shape = (2, 4, 16, 16)
    logits = jax.random.normal(k1, shape, dtype=jnp.float32)
    targets = (jax.random.uniform(k2, shape) > 0.5).astype(jnp.float32)

    loss = focal_loss(logits, targets)
    jax.block_until_ready(loss)
    ref = focal_loss_ref(logits, targets)
    assert jnp.allclose(loss, ref, rtol=1e-5, atol=1e-6), (loss, ref)

    # bf16 inputs stream through HBM at half width; upcast happens in-kernel.
    logits_bf16 = logits.astype(jnp.bfloat16)
    targets_bf16 = targets.astype(jnp.bfloat16)
    loss_bf16 = focal_loss(logits_bf16, targets_bf16)
    jax.block_until_ready(loss_bf16)
    ref_bf16 = focal_loss_ref(logits_bf16, targets_bf16)
    assert jnp.allclose(loss_bf16, ref_bf16, rtol=1e-5, atol=1e-6), (
        loss_bf16, ref_bf16)

    print("KERNEL_OK")
</pallas_src>

<mosaic_0001>
module attributes {stable_mosaic.version = 11 : i64} {
  func.func @kernel(%arg0: i32, %arg1: i32, %arg2: memref<16x128xf32, #tpu.memory_space<vmem>>, %arg3: memref<16x128xf32, #tpu.memory_space<vmem>>, %arg4: memref<1x16x128xf32, #tpu.memory_space<vmem>>) attributes {dimension_semantics = [#tpu.dimension_semantics<parallel>, #tpu.dimension_semantics<arbitrary>], iteration_bounds = array<i64: 1, 1>, scalar_prefetch = 0 : i64, scratch_operands = 0 : i64, tpu.core_type = #tpu.core_type<tc>, window_params = [{transform_indices = @transform_0, window_bounds = array<i64: 16, 128>}, {transform_indices = @transform_1, window_bounds = array<i64: 16, 128>}, {transform_indices = @transform_2, window_bounds = array<i64: 1, 16, 128>}]} {
    %c0_i32 = arith.constant 0 : i32
    %0 = arith.cmpi eq, %arg1, %c0_i32 : i32
    %1 = arith.extui %0 : i1 to i32
    %c0_i32_0 = arith.constant 0 : i32
    %2 = arith.cmpi ne, %1, %c0_i32_0 : i32
    scf.if %2 {
      %cst_13 = arith.constant 0.000000e+00 : f32
      %27 = vector.broadcast %cst_13 : f32 to vector<16x128xf32>
      %c0_14 = arith.constant 0 : index
      %c0_15 = arith.constant 0 : index
      %c0_16 = arith.constant 0 : index
      %28 = vector.load %arg4[%c0_14, %c0_15, %c0_16] : memref<1x16x128xf32, #tpu.memory_space<vmem>>, vector<1x16x128xf32>
      %29 = vector.shape_cast %28 : vector<1x16x128xf32> to vector<16x128xf32>
      %30 = vector.shape_cast %27 : vector<16x128xf32> to vector<1x16x128xf32>
      tpu.vector_store %arg4[%c0_14, %c0_15, %c0_16], %30 {strides = array<i32>} : memref<1x16x128xf32, #tpu.memory_space<vmem>>, vector<1x16x128xf32>,
    } else {
    }
    %c0 = arith.constant 0 : index
    %c0_1 = arith.constant 0 : index
    %3 = vector.load %arg2[%c0, %c0_1] : memref<16x128xf32, #tpu.memory_space<vmem>>, vector<16x128xf32>
    %c0_2 = arith.constant 0 : index
    %c0_3 = arith.constant 0 : index
    %4 = vector.load %arg3[%c0_2, %c0_3] : memref<16x128xf32, #tpu.memory_space<vmem>>, vector<16x128xf32>
    %cst = arith.constant 0.000000e+00 : f32
    %5 = vector.broadcast %cst : f32 to vector<16x128xf32>
    %6 = arith.maximumf %3, %5 : vector<16x128xf32>
    %7 = arith.mulf %3, %4 : vector<16x128xf32>
    %8 = arith.subf %6, %7 : vector<16x128xf32>
    %9 = math.absf %3 : vector<16x128xf32>
    %cst_4 = arith.constant 0.000000e+00 : f32
    %10 = vector.broadcast %cst_4 : f32 to vector<16x128xf32>
    %11 = arith.subf %10, %9 : vector<16x128xf32>
    %12 = math.exp %11 : vector<16x128xf32>
    %13 = math.log1p %12 : vector<16x128xf32>
    %14 = arith.addf %8, %13 : vector<16x128xf32>
    %cst_5 = arith.constant 0.000000e+00 : f32
    %15 = vector.broadcast %cst_5 : f32 to vector<16x128xf32>
    %16 = arith.subf %15, %14 : vector<16x128xf32>
    %17 = math.exp %16 : vector<16x128xf32>
    %cst_6 = arith.constant 1.000000e+00 : f32
    %18 = vector.broadcast %cst_6 : f32 to vector<16x128xf32>
    %19 = arith.subf %18, %17 : vector<16x128xf32>
    %20 = arith.mulf %19, %14 : vector<16x128xf32>
    %c0_7 = arith.constant 0 : index
    %c0_8 = arith.constant 0 : index
    %c0_9 = arith.constant 0 : index
    %21 = vector.load %arg4[%c0_7, %c0_8, %c0_9] : memref<1x16x128xf32, #tpu.memory_space<vmem>>, vector<1x16x128xf32>
    %22 = vector.shape_cast %21 : vector<1x16x128xf32> to vector<16x128xf32>
    %23 = arith.addf %22, %20 : vector<16x128xf32>
    %c0_10 = arith.constant 0 : index
    %c0_11 = arith.constant 0 : index
    %c0_12 = arith.constant 0 : index
    %24 = vector.load %arg4[%c0_10, %c0_11, %c0_12] : memref<1x16x128xf32, #tpu.memory_space<vmem>>, vector<1x16x128xf32>
    %25 = vector.shape_cast %24 : vector<1x16x128xf32> to vector<16x128xf32>
    %26 = vector.shape_cast %23 : vector<16x128xf32> to vector<1x16x128xf32>
    tpu.vector_store %arg4[%c0_10, %c0_11, %c0_12], %26 {strides = array<i32>} : memref<1x16x128xf32, #tpu.memory_space<vmem>>, vector<1x16x128xf32>,
    return
  }
  func.func @transform_0(%arg0: i32, %arg1: i32) -> (i32, i32) {
    %c1_i32 = arith.constant 1 : i32
    %0 = arith.muli %arg0, %c1_i32 : i32
    %1 = arith.addi %0, %arg1 : i32
    %c0_i32 = arith.constant 0 : i32
    %c0_i32_0 = arith.constant 0 : i32
    return %1, %c0_i32 : i32, i32
  }
  func.func @transform_1(%arg0: i32, %arg1: i32) -> (i32, i32) {
    %c1_i32 = arith.constant 1 : i32
    %0 = arith.muli %arg0, %c1_i32 : i32
    %1 = arith.addi %0, %arg1 : i32
    %c0_i32 = arith.constant 0 : i32
    %c0_i32_0 = arith.constant 0 : i32
    return %1, %c0_i32 : i32, i32
  }
  func.func @transform_2(%arg0: i32, %arg1: i32) -> (i32, i32, i32) {
    %c0_i32 = arith.constant 0 : i32
    %c0_i32_0 = arith.constant 0 : i32
    %c0_i32_1 = arith.constant 0 : i32
    return %arg0, %c0_i32, %c0_i32_0 : i32, i32, i32
  }
}

</mosaic_0001>

<bundles_post_ra>
// kernel: focal_loss.1
= control target key start
LH: loop header
LB: loop body
LE: loop exit
PB: predicated region body
PF: predicated region fallthrough
CT: control target
= control target key end

     0   :  { %s177_s0 = inlined_call_operand.vmem [shape: f32[16,128], index: 0, kind: input, shape index: {}]   ;;  %s178_s1 = inlined_call_operand.vmem [shape: f32[16,128], index: 1, kind: input, shape index: {}]   ;;  %s179_s2 = inlined_call_operand.vmem [shape: f32[1,16,128], index: 2, kind: output, shape index: {}]  }
   0x1   :  { %v61_v0 = vld [vmem:[%s177_s0] sm:$0xff]  ;;  %v62_v1 = vld [vmem:[%s177_s0 + $0x8] sm:$0xff] }
   0x2   :  { %v71_v2 = vand.u32 2147483647, %v61_v0  ;;  %v72_v3 = vand.u32 2147483647, %v62_v1  ;;  %v63_v14 = vld [vmem:[%s178_s1] sm:$0xff]  ;;  %v64_v15 = vld [vmem:[%s178_s1 + $0x8] sm:$0xff] }
   0x3   :  { %v65_v17 = vmax.f32 %v61_v0, 0.0  ;;  %v67_v18 = vmul.f32 %v63_v14, %v61_v0  ;;  %v66_v21 = vmax.f32 %v62_v1, 0.0  ;;  %v68_v22 = vmul.f32 %v64_v15, %v62_v1 }
   0x4   :  { %v73_v4 = vsub.f32 0.0, %v71_v2  ;;  %v74_v5 = vsub.f32 0.0, %v72_v3 }
   0x5   :  { %v69_v26 = vsub.f32 %v65_v17, %v67_v18  ;;  %v70_v30 = vsub.f32 %v66_v21, %v68_v22 }
   0x6   :  { %v75_v6 = vmul.f32 1.442695, %v73_v4  ;;  %v77_v7 = vmul.f32 1.442695, %v74_v5 }
   0x8   :  { %132 = vpow2.f32 %v75_v6 }
   0x9   :  { %134 = vpow2.f32 %v77_v7 }
  0x12   :  { %v133_v8 = vpop.eup %132 }
  0x13   :  { %v135_v9 = vpop.eup %134  ;;  %v79_v10 = vadd.f32 1.0, %v133_v8  ;;  %v82_v12 = vmul.f32 -0.5, %v133_v8  ;;  %v85_v19 = vand.u32 2147483647, %v133_v8 }
  0x14   :  { %v88_v11 = vadd.f32 1.0, %v135_v9  ;;  %v91_v13 = vmul.f32 -0.5, %v135_v9  ;;  %v94_v23 = vand.u32 2147483647, %v135_v9 }
  0x15   :  { %136 = vlog2.f32 %v79_v10  ;;  %v83_v16 = vadd.f32 1.0, %v82_v12  ;;  %vm86_vm0 = vcmp.lt.f32.partialorder %v85_v19, 0.0004427343 }
  0x16   :  { %138 = vlog2.f32 %v88_v11  ;;  %v92_v20 = vadd.f32 1.0, %v91_v13  ;;  %vm95_vm1 = vcmp.lt.f32.partialorder %v94_v23, 0.0004427343 }
  0x17   :  { %v84_v24 = vmul.f32 %v133_v8, %v83_v16 }
  0x18   :  { %v93_v27 = vmul.f32 %v135_v9, %v92_v20 }
  0x1f   :  { %v137_v25 = vpop.eup %136 }
  0x20   :  { %v139_v28 = vpop.eup %138  ;;  %v81_v29 = vmul.f32 0.6931472, %v137_v25 }
  0x21   :  { %v90_v31 = vmul.f32 0.6931472, %v139_v28 }
  0x22   :  { %v87_v32 = vsel %vm86_vm0, %v84_v24, %v81_v29 }
  0x23   :  { %v97_v33 = vadd.f32 %v87_v32, %v69_v26  ;;  %v96_v34 = vsel %vm95_vm1, %v93_v27, %v90_v31 }
  0x24   :  { %v98_v35 = vadd.f32 %v96_v34, %v70_v30 }
  0x25   :  { %v99_v36 = vsub.f32 0.0, %v97_v33 }
  0x26   :  { %v100_v37 = vsub.f32 0.0, %v98_v35 }
  0x27   :  { %v101_v38 = vmul.f32 1.442695, %v99_v36 }
  0x28   :  { %v103_v39 = vmul.f32 1.442695, %v100_v37 }
  0x29   :  { %140 = vpow2.f32 %v101_v38 }
  0x2a   :  { %142 = vpow2.f32 %v103_v39 }
  0x33   :  { %v141_v40 = vpop.eup %140 }
  0x34   :  { %v143_v41 = vpop.eup %142  ;;  %v105_v42 = vsub.f32 1.0, %v141_v40 }
  0x35   :  { %v106_v43 = vsub.f32 1.0, %v143_v41 }
  0x36   :  { %v107_v44 = vmul.f32 %v105_v42, %v97_v33 }
  0x37   :  { %v108_v45 = vmul.f32 %v106_v43, %v98_v35 }
  0x38   :  { %113 = vst [vmem:[%s179_s2] sm:$0xff] %v107_v44 }
  0x39   :  { %114 = vst [vmem:[%s179_s2 + $0x8] sm:$0xff] %v108_v45 }

</bundles_post_ra>
